<compile_context>
chip_gen: v6e
topology: v6e:2x2x1
jax: 0.10.0
libtpu: 0.0.40
codegen_flags: <defaults>
</compile_context>

<pallas_src>
import functools

import jax
import jax.numpy as jnp
from jax.experimental import pallas as pl
from jax.experimental.pallas import tpu as pltpu


def _linear_clamp_kernel(x_ref, w_ref, b_ref, o_ref, *, lower_bound):
    # x_ref: (M, K) bf16, w_ref: (K, N) bf16 -> MXU NN matmul, f32 accumulation.
    y = jnp.dot(x_ref[...], w_ref[...], preferred_element_type=jnp.float32)
    y = y + b_ref[...]                      # (M, N) + (1, N), f32 on the VPU
    if lower_bound is not None:
        # Fused clamp: max(max(y, min_value), max_value) == max(y, max(min, max)).
        y = jnp.maximum(y, jnp.float32(lower_bound))
    o_ref[...] = y.astype(o_ref.dtype)


def prepare_params(weight, bias):
    """One-time (outside the hot path) re-layout / cast of the parameters.

    weight: (N, K) f32 in PyTorch layout  ->  (K, N) bf16
    bias:   (N,)   f32                    ->  (1, N) f32
    """
    w_kn = jnp.asarray(weight).T.astype(jnp.bfloat16)   # persistent (K, N) copy
    b2d = jnp.asarray(bias).reshape(1, -1).astype(jnp.float32)
    return w_kn, b2d


def linear_clamp(x, w_kn, b2d, *, min_value=None, max_value=None):
    """x: (M, K) f32, w_kn: (K, N) bf16 (pre-transposed), b2d: (1, N) f32."""
    M, K = x.shape
    K2, N = w_kn.shape
    assert K == K2, (K, K2)

    # Fold the two clamp_min bounds at trace time (static Python scalars only).
    bounds = [v for v in (min_value, max_value) if v is not None]
    lower_bound = max(bounds) if bounds else None

    kernel = functools.partial(_linear_clamp_kernel, lower_bound=lower_bound)

    x_bf16 = x.astype(jnp.bfloat16)     # tiny (M*K); cast so MXU takes bf16 x bf16

    cost = pl.CostEstimate(
        flops=2 * M * K * N,
        bytes_accessed=2 * (M * K + K * N) + 4 * (N + M * N),
        transcendentals=0,
    )

    # Problem is tiny (~0.3 MiB total): single block, no grid, no pipelining —
    # whole arrays resident in VMEM for one kernel invocation.
    return pl.pallas_call(
        kernel,
        out_shape=jax.ShapeDtypeStruct((M, N), jnp.float32),
        in_specs=[
            pl.BlockSpec(memory_space=pltpu.MemorySpace.VMEM),  # x     (M, K) bf16
            pl.BlockSpec(memory_space=pltpu.MemorySpace.VMEM),  # w_kn  (K, N) bf16
            pl.BlockSpec(memory_space=pltpu.MemorySpace.VMEM),  # bias  (1, N) f32
        ],
        out_specs=pl.BlockSpec(memory_space=pltpu.MemorySpace.VMEM),
        cost_estimate=cost,
    )(x_bf16, w_kn, b2d)


if __name__ == "__main__":
    key = jax.random.PRNGKey(0)
    k_x, k_w, k_b = jax.random.split(key, 3)

    # Shapes implied by the module: x1 = (1, 256), Linear(256, 512).
    x = jax.random.normal(k_x, (1, 256), dtype=jnp.float32)
    # Deterministic synthetic parameters (PyTorch weight layout: (out, in)).
    weight = jax.random.normal(k_w, (512, 256), dtype=jnp.float32) * 0.05
    bias = jax.random.normal(k_b, (512,), dtype=jnp.float32) * 0.05

    # Default Model() has min_value=max_value=None (clamp_min(None) is not
    # meaningful in PyTorch); use concrete values so the clamp path runs.
    min_value, max_value = 0.0, 0.5

    # One-time param prep (transpose + bf16 cast) outside the hot path.
    w_kn, b2d = prepare_params(weight, bias)

    out = linear_clamp(x, w_kn, b2d, min_value=min_value, max_value=max_value)
    out = jax.block_until_ready(out)

    # Pure-JAX reference with the same bf16 inputs / f32 accumulation,
    # mirroring the PyTorch graph (two sequential clamp_mins).
    ref = jnp.dot(x.astype(jnp.bfloat16), w_kn,
                  preferred_element_type=jnp.float32) + bias
    ref = jnp.maximum(ref, min_value)
    ref = jnp.maximum(ref, max_value)

    # Loose sanity check against the full-f32 math as well.
    ref_f32 = jnp.maximum(jnp.maximum(x @ weight.T + bias, min_value), max_value)

    assert out.shape == (1, 512)
    assert jnp.allclose(out, ref, atol=2e-3, rtol=2e-3)
    assert jnp.allclose(out, ref_f32, atol=3e-2, rtol=3e-2)

    print("KERNEL_OK")
</pallas_src>

<mosaic_0001>
module attributes {stable_mosaic.version = 11 : i64} {
  func.func @_linear_clamp_kernel(%arg0: memref<1x256xbf16, #tpu.memory_space<vmem>>, %arg1: memref<256x512xbf16, #tpu.memory_space<vmem>>, %arg2: memref<1x512xf32, #tpu.memory_space<vmem>>, %arg3: memref<1x512xf32, #tpu.memory_space<vmem>>) attributes {dimension_semantics = [], scalar_prefetch = 0 : i64, scratch_operands = 0 : i64, tpu.core_type = #tpu.core_type<tc>} {
    %c0 = arith.constant 0 : index
    %c0_0 = arith.constant 0 : index
    %0 = vector.load %arg0[%c0, %c0_0] : memref<1x256xbf16, #tpu.memory_space<vmem>>, vector<1x256xbf16>
    %c0_1 = arith.constant 0 : index
    %c0_2 = arith.constant 0 : index
    %1 = vector.load %arg1[%c0_1, %c0_2] : memref<256x512xbf16, #tpu.memory_space<vmem>>, vector<256x512xbf16>
    %cst = arith.constant dense<0.000000e+00> : vector<1x512xf32>
    %2 = tpu.matmul %0, %1, %cst {dimension_numbers = #tpu.dot_dimension_numbers<[1], [0], [0], [1], [0, 0, 1, 1], [], []>} : vector<1x256xbf16>, vector<256x512xbf16>, vector<1x512xf32> -> vector<1x512xf32>
    %c0_3 = arith.constant 0 : index
    %c0_4 = arith.constant 0 : index
    %3 = vector.load %arg2[%c0_3, %c0_4] : memref<1x512xf32, #tpu.memory_space<vmem>>, vector<1x512xf32>
    %4 = arith.addf %2, %3 : vector<1x512xf32>
    %cst_5 = arith.constant 5.000000e-01 : f32
    %5 = vector.broadcast %cst_5 : f32 to vector<1x512xf32>
    %6 = arith.maximumf %4, %5 : vector<1x512xf32>
    %c0_6 = arith.constant 0 : index
    %c0_7 = arith.constant 0 : index
    %7 = vector.load %arg3[%c0_6, %c0_7] : memref<1x512xf32, #tpu.memory_space<vmem>>, vector<1x512xf32>
    tpu.vector_store %arg3[%c0_6, %c0_7], %6 {strides = array<i32>} : memref<1x512xf32, #tpu.memory_space<vmem>>, vector<1x512xf32>,
    return
  }
}

</mosaic_0001>

<bundles_post_ra>
// kernel: tpu_custom_call.1
= control target key start
LH: loop header
LB: loop body
LE: loop exit
PB: predicated region body
PF: predicated region fallthrough
CT: control target
= control target key end

     0   :  { %8 = vsyncpa [#allocation3], 0  ;;  %s929_s0 = inlined_call_operand.hbm [shape: bf16[1,256], index: 0, kind: input, shape index: {}]   ;;  %s930_s1 = inlined_call_operand.hbm [shape: bf16[256,512], index: 1, kind: input, shape index: {}]   ;;  %s931_s2 = inlined_call_operand.hbm [shape: f32[1,512], index: 2, kind: input, shape index: {}]   ;;  %s932_s3 = inlined_call_operand.hbm [shape: f32[1,512], index: 3, kind: output, shape index: {}]  }
   0x1   :  { %9 = vsyncpa [#allocation6], 0 }
   0x2   :  { %10 = vsyncpa [#allocation4], 0  ;;  %s874_s12 = smov [#allocation5]  }
   0x3   :  { %s26_s13 = sshll.u32 %s874_s12, 4  ;;  %s27_s13 = int_to_ptr.vmem [resolvable:$true] %s26_s13 }
   0x4   :  { %s796_s14 = scalar_lea.vmem %s27_s13, 8192  ;;  %p801_p1 = scmp.lt.s32.totalorder %s27_s13, %s27_s13 }
   0x5   :  { %p797_p0 = scmp.ne.s32.totalorder %s27_s13, %s796_s14  ;;  %p802_p2 = scmp.lt.s32.totalorder %s796_s14, %s796_s14 }
   0x7   :  { %p803_p3 = por %p802_p2, %p801_p1 }
   0x9   :  { %p804_p4 = pnand %p803_p3, %p797_p0 }
   0xb   :  { %807 = shalt.err (!%p804_p4)
}
   0xc   :  { %s875_s15 = smov 256   ;;  %s876_s16 = smov 16  }
   0xd   :  { %32 = dma.hbm_to_vmem [thread:$0]  %s930_s1, 8192, %s27_s13, [#allocation6], %s875_s15, %s875_s15, %s876_s16  }
   0xe   :  { %s877_s19 = smov [#allocation2]   ;;  %s878_s21 = smov [#allocation7]  }
   0xf   :  { %s17_s20 = sshll.u32 %s877_s19, 4  ;;  %s39_s22 = sshll.u32 %s878_s21, 4  ;;  %s18_s20 = int_to_ptr.vmem [resolvable:$true] %s17_s20  ;;  %s40_s22 = int_to_ptr.vmem [resolvable:$true] %s39_s22 }
  0x10   :  { %s816_s23 = scalar_lea.vmem %s18_s20, 32  ;;  %p821_p6 = scmp.lt.s32.totalorder %s18_s20, %s18_s20 }
  0x11   :  { %p817_p5 = scmp.ne.s32.totalorder %s18_s20, %s816_s23  ;;  %p822_p7 = scmp.lt.s32.totalorder %s816_s23, %s816_s23 }
  0x13   :  { %p823_p8 = por %p822_p7, %p821_p6 }
  0x15   :  { %p824_p9 = pnand %p823_p8, %p817_p5 }
  0x17   :  { %827 = shalt.err (!%p824_p9)
}
  0x18   :  { %20 = dma.hbm_to_vmem [thread:$0]  %s929_s0, 32, %s18_s20, [#allocation3]  }
  0x19   :  { %s836_s26 = scalar_lea.vmem %s40_s22, 64  ;;  %p841_p11 = scmp.lt.s32.totalorder %s40_s22, %s40_s22 }
  0x1a   :  { %p837_p10 = scmp.ne.s32.totalorder %s40_s22, %s836_s26  ;;  %p842_p12 = scmp.lt.s32.totalorder %s836_s26, %s836_s26 }
  0x1c   :  { %p843_p13 = por %p842_p12, %p841_p11 }
  0x1e   :  { %p844_p0 = pnand %p843_p13, %p837_p10 }
  0x20   :  { %847 = shalt.err (!%p844_p0)
}
  0x21   :  { %42 = dma.hbm_to_vmem [thread:$0]  %s931_s2, 64, %s40_s22, [#allocation6]  }
  0x22   :  { %868 = dma.done.wait [#allocation3], 32  }
  0x23   :  { %869 = vsyncadd [#allocation3], 4294967264 }
  0x24   :  { %870 = dma.done.wait [#allocation6], 8256  }
  0x25   :  { %871 = vsyncadd [#allocation6], 4294959040  ;;  %v692_v0 = vld [vmem:[#allocation5 + $0xe4] ss:$16 sps:$4 sm:$0xff]   ;;  %v694_v1 = vld [vmem:[#allocation5 + $0xec] ss:$16 sps:$4 sm:$0xff]   ;;  %v130_v40 = vlaneseq }
  0x26   :  { %484 = vmatprep.subr.bf16.mxu0 %v692_v0  ;;  %v696_v2 = vld [vmem:[#allocation5 + $0xe0] ss:$16 sps:$4 sm:$0xff]   ;;  %v697_v3 = vld [vmem:[#allocation5 + $0xe8] ss:$16 sps:$4 sm:$0xff]   ;;  %525 = vmatprep.subr.bf16.mxu1 %v694_v1  ;;  %v698_v4 = vld [vmem:[#allocation5 + $0xc4] ss:$16 sps:$4 sm:$0xff]  }
  0x27   :  { %485 = vmatpush1.bf16.msra.mxu0 %v696_v2  ;;  %526 = vmatpush1.bf16.msra.mxu1 %v697_v3  ;;  %v700_v5 = vld [vmem:[#allocation5 + $0xcc] ss:$16 sps:$4 sm:$0xff]   ;;  %v702_v6 = vld [vmem:[#allocation5 + $0xc0] ss:$16 sps:$4 sm:$0xff]   ;;  %v703_v7 = vld [vmem:[#allocation5 + $0xc8] ss:$16 sps:$4 sm:$0xff]  }
  0x28   :  { %486 = vmatprep.subr.bf16.mxu0 %v698_v4  ;;  %527 = vmatprep.subr.bf16.mxu1 %v700_v5  ;;  %v704_v8 = vld [vmem:[#allocation5 + $0xa4] ss:$16 sps:$4 sm:$0xff]   ;;  %v706_v9 = vld [vmem:[#allocation5 + $0xac] ss:$16 sps:$4 sm:$0xff]   ;;  %v708_v10 = vld [vmem:[#allocation5 + $0xa0] ss:$16 sps:$4 sm:$0xff]  }
  0x29   :  { %v709_v11 = vld [vmem:[#allocation5 + $0xa8] ss:$16 sps:$4 sm:$0xff]   ;;  %v710_v12 = vld [vmem:[#allocation5 + $0x84] ss:$16 sps:$4 sm:$0xff]   ;;  %v712_v13 = vld [vmem:[#allocation5 + $0x8c] ss:$16 sps:$4 sm:$0xff]  }
  0x2a   :  { %v714_v14 = vld [vmem:[#allocation5 + $0x80] ss:$16 sps:$4 sm:$0xff]   ;;  %v715_v15 = vld [vmem:[#allocation5 + $0x88] ss:$16 sps:$4 sm:$0xff]   ;;  %v716_v16 = vld [vmem:[#allocation5 + $0x64] ss:$16 sps:$4 sm:$0xff]  }
  0x2b   :  { %487 = vmatpush1.bf16.msra.mxu0 %v702_v6  ;;  %528 = vmatpush1.bf16.msra.mxu1 %v703_v7  ;;  %v718_v17 = vld [vmem:[#allocation5 + $0x6c] ss:$16 sps:$4 sm:$0xff]   ;;  %v720_v18 = vld [vmem:[#allocation5 + $0x60] ss:$16 sps:$4 sm:$0xff]   ;;  %v721_v19 = vld [vmem:[#allocation5 + $0x68] ss:$16 sps:$4 sm:$0xff]  }
  0x2c   :  { %488 = vmatprep.subr.bf16.mxu0 %v704_v8  ;;  %529 = vmatprep.subr.bf16.mxu1 %v706_v9  ;;  %v722_v20 = vld [vmem:[#allocation5 + $0x44] ss:$16 sps:$4 sm:$0xff]   ;;  %v724_v21 = vld [vmem:[#allocation5 + $0x4c] ss:$16 sps:$4 sm:$0xff]   ;;  %v726_v22 = vld [vmem:[#allocation5 + $0x40] ss:$16 sps:$4 sm:$0xff]  }
  0x2d   :  { %v727_v23 = vld [vmem:[#allocation5 + $0x48] ss:$16 sps:$4 sm:$0xff]   ;;  %v728_v24 = vld [vmem:[#allocation5 + $0x24] ss:$16 sps:$4 sm:$0xff]   ;;  %v730_v25 = vld [vmem:[#allocation5 + $0x2c] ss:$16 sps:$4 sm:$0xff]  }
  0x2e   :  { %v732_v26 = vld [vmem:[#allocation5 + $0x20] ss:$16 sps:$4 sm:$0xff]   ;;  %v733_v27 = vld [vmem:[#allocation5 + $0x28] ss:$16 sps:$4 sm:$0xff]   ;;  %v734_v28 = vld [vmem:[#allocation5 + $0x4] ss:$16 sps:$4 sm:$0xff]  }
  0x2f   :  { %489 = vmatpush1.bf16.msra.mxu0 %v708_v10  ;;  %530 = vmatpush1.bf16.msra.mxu1 %v709_v11  ;;  %v736_v29 = vld [vmem:[#allocation5 + $0xc] ss:$16 sps:$4 sm:$0xff]   ;;  %v738_v30 = vld [vmem:[#allocation5] ss:$16 sps:$4 sm:$0xff]   ;;  %v739_v31 = vld [vmem:[#allocation5 + $0x8] ss:$16 sps:$4 sm:$0xff]  }
  0x30   :  { %490 = vmatprep.subr.bf16.mxu0 %v710_v12  ;;  %531 = vmatprep.subr.bf16.mxu1 %v712_v13  ;;  %v740_v32 = vld [vmem:[#allocation5 + $0x1e4] ss:$16 sps:$4 sm:$0xff]   ;;  %v742_v33 = vld [vmem:[#allocation5 + $0x1ec] ss:$16 sps:$4 sm:$0xff]   ;;  %v744_v34 = vld [vmem:[#allocation5 + $0x1e0] ss:$16 sps:$4 sm:$0xff]  }
  0x31   :  { %v745_v35 = vld [vmem:[#allocation5 + $0x1e8] ss:$16 sps:$4 sm:$0xff]   ;;  %v746_v36 = vld [vmem:[#allocation5 + $0x1c4] ss:$16 sps:$4 sm:$0xff]   ;;  %v748_v37 = vld [vmem:[#allocation5 + $0x1cc] ss:$16 sps:$4 sm:$0xff]  }
  0x32   :  { %v879_v38 = vmov 1966171168   ;;  %v750_v41 = vld [vmem:[#allocation5 + $0x1c0] ss:$16 sps:$4 sm:$0xff]   ;;  %v751_v42 = vld [vmem:[#allocation5 + $0x1c8] ss:$16 sps:$4 sm:$0xff]  }
  0x33   :  { %491 = vmatpush1.bf16.msra.mxu0 %v714_v14  ;;  %532 = vmatpush1.bf16.msra.mxu1 %v715_v15  ;;  %v128_v39 = vunpack.c.l.s4 %v879_v38  ;;  %v752_v43 = vld [vmem:[#allocation5 + $0x1a4] ss:$16 sps:$4 sm:$0xff]   ;;  %v754_v44 = vld [vmem:[#allocation5 + $0x1ac] ss:$16 sps:$4 sm:$0xff]   ;;  %v911_v46 = vshrl.u32 %v130_v40, 7  ;;  %s880_s0 = smov [#allocation8]  }
  0x34   :  { %492 = vmatprep.subr.bf16.mxu0 %v716_v16  ;;  %533 = vmatprep.subr.bf16.mxu1 %v718_v17  ;;  %v756_v47 = vld [vmem:[#allocation5 + $0x1a0] ss:$16 sps:$4 sm:$0xff]   ;;  %v757_v48 = vld [vmem:[#allocation5 + $0x1a8] ss:$16 sps:$4 sm:$0xff]   ;;  %v758_v49 = vld [vmem:[#allocation5 + $0x184] ss:$16 sps:$4 sm:$0xff]  }
  0x35   :  { %v129_v45 = vunpack.c.0.s8 %v128_v39  ;;  %v760_v50 = vld [vmem:[#allocation5 + $0x18c] ss:$16 sps:$4 sm:$0xff]   ;;  %v762_v53 = vld [vmem:[#allocation5 + $0x180] ss:$16 sps:$4 sm:$0xff]   ;;  %v763_v54 = vld [vmem:[#allocation5 + $0x188] ss:$16 sps:$4 sm:$0xff]  }
  0x36   :  { %v620_v52 = vld.sshfl [vmem:[#allocation2] sm:$0x11 pattern:$0x75316420]  ;;  %v764_v56 = vld [vmem:[#allocation5 + $0x164] ss:$16 sps:$4 sm:$0xff]  }
  0x37   :  { %493 = vmatpush1.bf16.msra.mxu0 %v720_v18  ;;  %534 = vmatpush1.bf16.msra.mxu1 %v721_v19  ;;  %v914_v51 = vsub.s32 %v129_v45, %v911_v46  ;;  %v126_v55 = vcombine.high %v620_v52, %v620_v52  ;;  %v766_v57 = vld [vmem:[#allocation5 + $0x16c] ss:$16 sps:$4 sm:$0xff]   ;;  %v768_v59 = vld [vmem:[#allocation5 + $0x160] ss:$16 sps:$4 sm:$0xff]   ;;  %v769_v60 = vld [vmem:[#allocation5 + $0x168] ss:$16 sps:$4 sm:$0xff]  }
  0x38   :  { %494 = vmatprep.subr.bf16.mxu0 %v722_v20  ;;  %535 = vmatprep.subr.bf16.mxu1 %v724_v21  ;;  %v770_v61 = vld [vmem:[#allocation5 + $0x144] ss:$16 sps:$4 sm:$0xff]   ;;  %v772_v62 = vld [vmem:[#allocation5 + $0x14c] ss:$16 sps:$4 sm:$0xff]   ;;  %v774_v63 = vld [vmem:[#allocation5 + $0x140] ss:$16 sps:$4 sm:$0xff]  }
  0x39   :  { %v140_v58 = vrot.slane %v126_v55, %v914_v51  ;;  %v775_v0 = vld [vmem:[#allocation5 + $0x148] ss:$16 sps:$4 sm:$0xff]   ;;  %v776_v1 = vld [vmem:[#allocation5 + $0x124] ss:$16 sps:$4 sm:$0xff]   ;;  %v778_v2 = vld [vmem:[#allocation5 + $0x12c] ss:$16 sps:$4 sm:$0xff]   ;;  %v133_v9 = vrot.slane %v620_v52, %v914_v51 }
  0x3a   :  { %v780_v3 = vld [vmem:[#allocation5 + $0x120] ss:$16 sps:$4 sm:$0xff]   ;;  %v781_v4 = vld [vmem:[#allocation5 + $0x128] ss:$16 sps:$4 sm:$0xff]   ;;  %v782_v5 = vld [vmem:[#allocation5 + $0x104] ss:$16 sps:$4 sm:$0xff]  }
  0x3b   :  { %495 = vmatpush1.bf16.msra.mxu0 %v726_v22  ;;  %536 = vmatpush1.bf16.msra.mxu1 %v727_v23  ;;  %v784_v6 = vld [vmem:[#allocation5 + $0x10c] ss:$16 sps:$4 sm:$0xff]   ;;  %v786_v7 = vld [vmem:[#allocation5 + $0x100] ss:$16 sps:$4 sm:$0xff]   ;;  %v787_v8 = vld [vmem:[#allocation5 + $0x108] ss:$16 sps:$4 sm:$0xff]  }
  0x3c   :  { %496 = vmatprep.subr.bf16.mxu0 %v728_v24  ;;  %537 = vmatprep.subr.bf16.mxu1 %v730_v25  ;;  %v466_v10 = vsub.s32 0, %v911_v46  ;;  %v474_v11 = vsub.s32 2, %v911_v46  ;;  %v117_v12 = vld [vmem:[#allocation7] sm:$0xf]  ;;  %v470_v13 = vsub.s32 1, %v911_v46  ;;  %v478_v14 = vsub.s32 3, %v911_v46 }
  0x3d   :  { %516 = vmatprep.mubr.bf16.mxu0 %v140_v58  ;;  %557 = vmatprep.mubr.bf16.mxu1 %v140_v58  ;;  %s610_s2 = sshll.u32 %s880_s0, 4  ;;  %vm601_vm0 = vcmp.lt.s32.totalorder %v130_v40, 512  ;;  %s611_s2 = int_to_ptr.vmem [resolvable:$true] %s610_s2 }
  0x3e   :  { %v467_v15 = vrot.slane %v117_v12, %v466_v10  ;;  %v475_v16 = vrot.slane %v117_v12, %v474_v11  ;;  %v471_v17 = vrot.slane %v117_v12, %v470_v13  ;;  %v479_v18 = vrot.slane %v117_v12, %v478_v14  ;;  %s848_s28 = scalar_lea.vmem %s611_s2, 64  ;;  %p853_p2 = scmp.lt.s32.totalorder %s611_s2, %s611_s2 }
  0x3f   :  { %497 = vmatpush1.bf16.msra.mxu0 %v732_v26  ;;  %538 = vmatpush1.bf16.msra.mxu1 %v733_v27  ;;  %p849_p1 = scmp.ne.s32.totalorder %s611_s2, %s848_s28  ;;  %p854_p3 = scmp.lt.s32.totalorder %s848_s28, %s848_s28 }
  0x40   :  { %498 = vmatprep.subr.bf16.mxu0 %v734_v28  ;;  %539 = vmatprep.subr.bf16.mxu1 %v736_v29 }
  0x41   :  { %p855_p4 = por %p854_p3, %p853_p2 }
  0x43   :  { %499 = vmatpush1.bf16.msra.mxu0 %v738_v30  ;;  %540 = vmatpush1.bf16.msra.mxu1 %v739_v31  ;;  %p856_p5 = pnand %p855_p4, %p849_p1 }
  0x44   :  { %500 = vmatprep.subr.bf16.mxu0 %v740_v32  ;;  %541 = vmatprep.subr.bf16.mxu1 %v742_v33 }
  0x47   :  { %501 = vmatpush2.bf16.msra.mxu0 %v744_v34  ;;  %542 = vmatpush2.bf16.msra.mxu1 %v745_v35 }
  0x48   :  { %502 = vmatprep.subr.bf16.mxu0 %v746_v36  ;;  %543 = vmatprep.subr.bf16.mxu1 %v748_v37 }
  0x4b   :  { %503 = vmatpush2.bf16.msra.mxu0 %v750_v41  ;;  %544 = vmatpush2.bf16.msra.mxu1 %v751_v42 }
  0x4c   :  { %504 = vmatprep.subr.bf16.mxu0 %v752_v43  ;;  %545 = vmatprep.subr.bf16.mxu1 %v754_v44 }
  0x4f   :  { %505 = vmatpush2.bf16.msra.mxu0 %v756_v47  ;;  %546 = vmatpush2.bf16.msra.mxu1 %v757_v48 }
  0x50   :  { %506 = vmatprep.subr.bf16.mxu0 %v758_v49  ;;  %547 = vmatprep.subr.bf16.mxu1 %v760_v50 }
  0x53   :  { %507 = vmatpush2.bf16.msra.mxu0 %v762_v53  ;;  %548 = vmatpush2.bf16.msra.mxu1 %v763_v54 }
  0x54   :  { %508 = vmatprep.subr.bf16.mxu0 %v764_v56  ;;  %549 = vmatprep.subr.bf16.mxu1 %v766_v57 }
  0x57   :  { %509 = vmatpush2.bf16.msra.mxu0 %v768_v59  ;;  %550 = vmatpush2.bf16.msra.mxu1 %v769_v60 }
  0x58   :  { %510 = vmatprep.subr.bf16.mxu0 %v770_v61  ;;  %551 = vmatprep.subr.bf16.mxu1 %v772_v62 }
  0x5b   :  { %511 = vmatpush2.bf16.msra.mxu0 %v774_v63  ;;  %552 = vmatpush2.bf16.msra.mxu1 %v775_v0 }
  0x5c   :  { %512 = vmatprep.subr.bf16.mxu0 %v776_v1  ;;  %553 = vmatprep.subr.bf16.mxu1 %v778_v2 }
  0x5f   :  { %513 = vmatpush2.bf16.msra.mxu0 %v780_v3  ;;  %554 = vmatpush2.bf16.msra.mxu1 %v781_v4 }
  0x60   :  { %514 = vmatprep.subr.bf16.mxu0 %v782_v5  ;;  %555 = vmatprep.subr.bf16.mxu1 %v784_v6 }
  0x63   :  { %515 = vmatpush2.bf16.msra.mxu0 %v786_v7  ;;  %556 = vmatpush2.bf16.msra.mxu1 %v787_v8 }
  0x66   :  { %517 = vmatmul.mubr.bf16.vlgmr.msra.gmra.mxu0 %v133_v9  ;;  %558 = vmatmul.mubr.bf16.vlgmr.msra.gmra.mxu1 %v133_v9 }
 0x126   :  { %v518_v19 = vpop.f32.mrf.mxu0  ;;  %v559_v20 = vpop.f32.mrf.mxu1 }
 0x127   :  { %v519_v21 = vadd.f32 %v518_v19, %v467_v15  ;;  %v560_v22 = vadd.f32 %v559_v20, %v475_v16 }
 0x128   :  { %v520_v23 = vpop.f32.mrf.mxu0  ;;  %v561_v24 = vpop.f32.mrf.mxu1 }
 0x129   :  { %v521_v25 = vadd.f32 %v520_v23, %v471_v17  ;;  %v562_v26 = vadd.f32 %v561_v24, %v479_v18  ;;  %v566_v29 = vmax.f32 %v519_v21, 0.5  ;;  %v568_v30 = vmax.f32 %v560_v22, 0.5 }
 0x12a   :  { %v522_v27 = vpop.f32.mrf.mxu0  ;;  %v563_v28 = vpop.f32.mrf.mxu1 }
 0x12b   :  { %v567_v31 = vmax.f32 %v521_v25, 0.5  ;;  %v569_v32 = vmax.f32 %v562_v26, 0.5 }
 0x12c   :  { %v523_v33 = vpop.f32.mrf.mxu0  ;;  %v564_v34 = vpop.f32.mrf.mxu1 }
 0x12d   :  { %v574_v35 = vcombine.low %v566_v29, %v567_v31  ;;  %v575_v36 = vcombine.low %v568_v30, %v569_v32 }
 0x12f   :  { %v582_v37 = vrot.slane %v574_v35, %v914_v51  ;;  %v589_v38 = vrot.slane %v575_v36, %v914_v51 }
 0x131   :  { %v590_v39 = vcombine.low %v582_v37, %v589_v38 }
 0x133   :  { %v597_v41 = vrot.slane %v590_v39, %v914_v51 }
 0x135   :  { %603 = vst.msk [vmem:[#allocation8] sm:$0xf] %vm601_vm0, %v597_v41 }
 0x136   :  { %859 = shalt.err (!%p856_p5)
}
 0x137   :  { %613 = dma.vmem_to_hbm [thread:$0]  %s611_s2, 64, %s932_s3, [#allocation4]  }
 0x138   :  { %872 = dma.done.wait [#allocation4], 64  }
 0x139   :  { %873 = vsyncadd [#allocation4], 4294967232 }
 0x13a   :  { %617 = vsyncpa [#allocation3], 1 }
 0x13b   :  { %618 = vsyncpa [#allocation6], 1 }
 0x13c   :  { %619 = vsyncpa [#allocation4], 1 }

</bundles_post_ra>
